<compile_context>
chip_gen: v7x
topology: tpu7x:2x2x1
jax: 0.10.0
libtpu: 0.0.40
codegen_flags: <defaults>
</compile_context>

<pallas_src>
import functools

import jax
import jax.numpy as jnp
from jax.experimental import pallas as pl
from jax.experimental.pallas import tpu as pltpu


def _pointwise_kernel(w_ref, x_ref, o_ref, *, channels: int, chunk_rows: int):
    """y[b, c, r, :] = sum_k w[c, k] * x[b, k, r, :] on a (bt, C, t_s, 128) block.

    w_ref: (C, C) float32 in SMEM (scalar reads, broadcast on the VPU).
    x_ref/o_ref: (bt, C, t_s, 128) VMEM blocks, minor dims dense from HW.
    """
    t_s = x_ref.shape[2]

    def do_chunk(r0, rows):
        # k-outer / c-inner: each input channel chunk is loaded exactly once;
        # the C accumulators stay resident in vregs for the whole chunk.
        accs = [None] * channels
        for k in range(channels):
            xk = x_ref[:, k, pl.ds(r0, rows), :].astype(jnp.float32)  # (bt, rows, 128)
            for c in range(channels):
                term = w_ref[c, k] * xk
                accs[c] = term if accs[c] is None else accs[c] + term
        for c in range(channels):
            o_ref[:, c, pl.ds(r0, rows), :] = accs[c].astype(o_ref.dtype)

    n_full = t_s // chunk_rows
    tail = t_s - n_full * chunk_rows

    if n_full == 1 and tail == 0:
        # Single chunk covers the whole block (small-problem path): no loop.
        do_chunk(0, chunk_rows)
    else:
        if n_full > 0:
            @pl.loop(0, n_full)
            def _(ci):
                do_chunk(pl.multiple_of(ci * chunk_rows, chunk_rows), chunk_rows)
        if tail > 0:
            do_chunk(n_full * chunk_rows, tail)


def _pick_tiles(B: int, C: int, S: int, itemsize: int):
    """Choose (bt, t_s): rows of 128 lanes per block, sized in bytes."""
    ROW_BYTES = 128 * itemsize            # one (1, 128) lane row of one channel
    BLOCK_BYTES_TARGET = 4 << 20          # ~4 MiB of input traffic per grid step
    MIN_STEPS = 8                         # feed both v7x TCs + the pipeline

    rows_cap = max(8, (BLOCK_BYTES_TARGET // (C * ROW_BYTES)) // 8 * 8)

    if S <= rows_cap:
        t_s = S                            # full S (always a legal block dim)
        bt = max(1, min(B, BLOCK_BYTES_TARGET // max(1, C * S * ROW_BYTES)))
        # keep enough grid steps for megacore sharding / pipelining
        while bt > 1 and pl.cdiv(B, bt) * pl.cdiv(S, t_s) < MIN_STEPS:
            bt = max(1, bt // 2)
    else:
        bt = 1
        t_s = rows_cap
        while t_s > 8 and pl.cdiv(B, bt) * pl.cdiv(S, t_s) < MIN_STEPS:
            t_s = max(8, (t_s // 2) // 8 * 8)
    return bt, t_s


def _pick_chunk(bt: int, C: int, t_s: int):
    """Rows per in-kernel chunk so (C accumulators + 1 input chunk) stay in vregs."""
    # Budget ~40 of the 64 f32 vregs: (C + 1) * bt * rows / 8 <= 40.
    rows = max(8, ((40 * 8) // ((C + 1) * max(bt, 1))) // 8 * 8)
    return min(t_s, rows)


def pointwise_forward(x_bchw, w, *, inverse: bool):
    """Replicates Pointwise.forward(input_, aux=None, inverse=inverse).

    Returns (y_bchw, logd) with y_bchw.shape == x_bchw.shape, logd.shape == (B,).
    """
    B, C, H, W = x_bchw.shape
    assert w.shape == (C, C)
    HW = H * W

    # TODO(synk): matrix inverse / slogdet of the tiny (C, C) weight stay in
    # plain-JAX float32 glue (PyTorch uses float64 slogdet); a solve-based
    # inverse / host f64 would be numerically stronger for ill-conditioned w.
    w_eff = (jnp.linalg.inv(w) if inverse else w).astype(jnp.float32)

    # TODO(synk): for C >~ 32 this kernel should switch to an MXU matmul path;
    # for the small channel counts this module targets, the VPU path wins.

    # Lane-dense view: (B, C, S, 128) with S = ceil(HW / 128).
    HW_pad = pl.cdiv(HW, 128) * 128
    x3 = x_bchw.reshape(B, C, HW)
    if HW_pad != HW:
        x3 = jnp.pad(x3, ((0, 0), (0, 0), (0, HW_pad - HW)))
    S = HW_pad // 128
    x4 = x3.reshape(B, C, S, 128)

    itemsize = jnp.dtype(x_bchw.dtype).itemsize
    bt, t_s = _pick_tiles(B, C, S, itemsize)
    chunk_rows = _pick_chunk(bt, C, t_s)
    grid = (pl.cdiv(B, bt), pl.cdiv(S, t_s))

    kernel = functools.partial(_pointwise_kernel, channels=C, chunk_rows=chunk_rows)

    y4 = pl.pallas_call(
        kernel,
        out_shape=jax.ShapeDtypeStruct((B, C, S, 128), x_bchw.dtype),
        grid=grid,
        in_specs=[
            # Whole (C, C) weight resident in SMEM for the whole kernel.
            pl.BlockSpec(memory_space=pltpu.MemorySpace.SMEM),
            # Lane-dense activation blocks: minor dims (t_s, 128) from HW.
            pl.BlockSpec((bt, C, t_s, 128), lambda b, s: (b, 0, s, 0)),
        ],
        out_specs=pl.BlockSpec((bt, C, t_s, 128), lambda b, s: (b, 0, s, 0)),
        compiler_params=pltpu.CompilerParams(
            dimension_semantics=("parallel", "parallel"),
            # 2 in + 2 out double buffers at ~4 MiB each stay well under this;
            # 48 MiB fits v5e/v6e (128 MiB) and v7x (64 MiB) physical VMEM.
            vmem_limit_bytes=48 * 1024 * 1024,
        ),
        cost_estimate=pl.CostEstimate(
            flops=2 * B * C * C * HW_pad,
            transcendentals=0,
            bytes_accessed=2 * B * C * HW_pad * itemsize + C * C * 4,
        ),
    )(w_eff, x4)

    y3 = y4.reshape(B, C, HW_pad)
    if HW_pad != HW:
        y3 = y3[:, :, :HW]
    y_bchw = y3.reshape(B, C, H, W)

    # log-determinant term: (+/-1) * H * W * log|det(w)| broadcast over batch.
    _, logabsdet = jnp.linalg.slogdet(w.astype(jnp.float32))
    sign = -1.0 if inverse else 1.0
    logd = jnp.full((B,), sign * H * W * logabsdet, dtype=x_bchw.dtype)

    assert y_bchw.shape == x_bchw.shape and logd.shape == (B,)
    return y_bchw, logd


if __name__ == "__main__":
    key = jax.random.PRNGKey(0)
    k_w, k_x = jax.random.split(key)

    B, C, H, W = 2, 4, 16, 16
    noisy_identity_init = 0.001

    # Deterministic parameter init mirroring Pointwise.__init__:
    # w = eye(C) + 0.001 * randn(C, C)
    w = jnp.eye(C, dtype=jnp.float32) + noisy_identity_init * jax.random.normal(
        k_w, (C, C), dtype=jnp.float32
    )
    x = jax.random.normal(k_x, (B, C, H, W), dtype=jnp.float32)

    # Forward direction (x -> z)
    y, logd = pointwise_forward(x, w, inverse=False)
    y = jax.block_until_ready(y)
    logd = jax.block_until_ready(logd)

    # Reference check against plain-JAX semantics of the PyTorch module.
    xflat_ref = jnp.transpose(x, (0, 2, 3, 1)).reshape(B * H * W, C)
    y_ref = jnp.transpose((xflat_ref @ w.T).reshape(B, H, W, C), (0, 3, 1, 2))
    logd_ref = H * W * jnp.linalg.slogdet(w)[1] * jnp.ones((B,), dtype=x.dtype)
    assert jnp.allclose(y, y_ref, atol=1e-5), "forward output mismatch"
    assert jnp.allclose(logd, logd_ref, atol=1e-4), "forward logd mismatch"

    # Inverse direction (z -> x) should round-trip.
    x_rec, logd_inv = pointwise_forward(y, w, inverse=True)
    x_rec = jax.block_until_ready(x_rec)
    assert jnp.allclose(x_rec, x, atol=1e-4), "inverse round-trip mismatch"
    assert jnp.allclose(logd_inv, -logd_ref, atol=1e-4), "inverse logd mismatch"

    print("KERNEL_OK")
</pallas_src>

<mosaic_0001>
module attributes {stable_mosaic.version = 11 : i64} {
  func.func @_pointwise_kernel(%arg0: i32, %arg1: i32, %arg2: memref<4x4xf32, #tpu.memory_space<smem>>, %arg3: memref<1x4x2x128xf32, #tpu.memory_space<vmem>>, %arg4: memref<1x4x2x128xf32, #tpu.memory_space<vmem>>) attributes {dimension_semantics = [#tpu.dimension_semantics<parallel>, #tpu.dimension_semantics<parallel>], iteration_bounds = array<i64: 2, 1>, scalar_prefetch = 0 : i64, scratch_operands = 0 : i64, tpu.core_type = #tpu.core_type<tc>, window_params = [{transform_indices = @transform_0, window_bounds = array<i64: 4, 4>}, {transform_indices = @transform_1, window_bounds = array<i64: 1, 4, 2, 128>}, {transform_indices = @transform_2, window_bounds = array<i64: 1, 4, 2, 128>}]} {
    %c0 = arith.constant 0 : index
    %c0_0 = arith.constant 0 : index
    %c0_1 = arith.constant 0 : index
    %c0_2 = arith.constant 0 : index
    %0 = vector.load %arg3[%c0, %c0_0, %c0_1, %c0_2] : memref<1x4x2x128xf32, #tpu.memory_space<vmem>>, vector<1x1x2x128xf32>
    %1 = vector.shape_cast %0 : vector<1x1x2x128xf32> to vector<1x2x128xf32>
    %c0_3 = arith.constant 0 : index
    %c0_4 = arith.constant 0 : index
    %2 = memref.load %arg2[%c0_3, %c0_4] : memref<4x4xf32, #tpu.memory_space<smem>>
    %3 = vector.broadcast %2 : f32 to vector<1x2x128xf32>
    %4 = arith.mulf %3, %1 : vector<1x2x128xf32>
    %c1 = arith.constant 1 : index
    %c0_5 = arith.constant 0 : index
    %5 = memref.load %arg2[%c1, %c0_5] : memref<4x4xf32, #tpu.memory_space<smem>>
    %6 = vector.broadcast %5 : f32 to vector<1x2x128xf32>
    %7 = arith.mulf %6, %1 : vector<1x2x128xf32>
    %c2 = arith.constant 2 : index
    %c0_6 = arith.constant 0 : index
    %8 = memref.load %arg2[%c2, %c0_6] : memref<4x4xf32, #tpu.memory_space<smem>>
    %9 = vector.broadcast %8 : f32 to vector<1x2x128xf32>
    %10 = arith.mulf %9, %1 : vector<1x2x128xf32>
    %c3 = arith.constant 3 : index
    %c0_7 = arith.constant 0 : index
    %11 = memref.load %arg2[%c3, %c0_7] : memref<4x4xf32, #tpu.memory_space<smem>>
    %12 = vector.broadcast %11 : f32 to vector<1x2x128xf32>
    %13 = arith.mulf %12, %1 : vector<1x2x128xf32>
    %c0_8 = arith.constant 0 : index
    %c1_9 = arith.constant 1 : index
    %c0_10 = arith.constant 0 : index
    %c0_11 = arith.constant 0 : index
    %14 = vector.load %arg3[%c0_8, %c1_9, %c0_10, %c0_11] : memref<1x4x2x128xf32, #tpu.memory_space<vmem>>, vector<1x1x2x128xf32>
    %15 = vector.shape_cast %14 : vector<1x1x2x128xf32> to vector<1x2x128xf32>
    %c0_12 = arith.constant 0 : index
    %c1_13 = arith.constant 1 : index
    %16 = memref.load %arg2[%c0_12, %c1_13] : memref<4x4xf32, #tpu.memory_space<smem>>
    %17 = vector.broadcast %16 : f32 to vector<1x2x128xf32>
    %18 = arith.mulf %17, %15 : vector<1x2x128xf32>
    %19 = arith.addf %4, %18 : vector<1x2x128xf32>
    %c1_14 = arith.constant 1 : index
    %c1_15 = arith.constant 1 : index
    %20 = memref.load %arg2[%c1_14, %c1_15] : memref<4x4xf32, #tpu.memory_space<smem>>
    %21 = vector.broadcast %20 : f32 to vector<1x2x128xf32>
    %22 = arith.mulf %21, %15 : vector<1x2x128xf32>
    %23 = arith.addf %7, %22 : vector<1x2x128xf32>
    %c2_16 = arith.constant 2 : index
    %c1_17 = arith.constant 1 : index
    %24 = memref.load %arg2[%c2_16, %c1_17] : memref<4x4xf32, #tpu.memory_space<smem>>
    %25 = vector.broadcast %24 : f32 to vector<1x2x128xf32>
    %26 = arith.mulf %25, %15 : vector<1x2x128xf32>
    %27 = arith.addf %10, %26 : vector<1x2x128xf32>
    %c3_18 = arith.constant 3 : index
    %c1_19 = arith.constant 1 : index
    %28 = memref.load %arg2[%c3_18, %c1_19] : memref<4x4xf32, #tpu.memory_space<smem>>
    %29 = vector.broadcast %28 : f32 to vector<1x2x128xf32>
    %30 = arith.mulf %29, %15 : vector<1x2x128xf32>
    %31 = arith.addf %13, %30 : vector<1x2x128xf32>
    %c0_20 = arith.constant 0 : index
    %c2_21 = arith.constant 2 : index
    %c0_22 = arith.constant 0 : index
    %c0_23 = arith.constant 0 : index
    %32 = vector.load %arg3[%c0_20, %c2_21, %c0_22, %c0_23] : memref<1x4x2x128xf32, #tpu.memory_space<vmem>>, vector<1x1x2x128xf32>
    %33 = vector.shape_cast %32 : vector<1x1x2x128xf32> to vector<1x2x128xf32>
    %c0_24 = arith.constant 0 : index
    %c2_25 = arith.constant 2 : index
    %34 = memref.load %arg2[%c0_24, %c2_25] : memref<4x4xf32, #tpu.memory_space<smem>>
    %35 = vector.broadcast %34 : f32 to vector<1x2x128xf32>
    %36 = arith.mulf %35, %33 : vector<1x2x128xf32>
    %37 = arith.addf %19, %36 : vector<1x2x128xf32>
    %c1_26 = arith.constant 1 : index
    %c2_27 = arith.constant 2 : index
    %38 = memref.load %arg2[%c1_26, %c2_27] : memref<4x4xf32, #tpu.memory_space<smem>>
    %39 = vector.broadcast %38 : f32 to vector<1x2x128xf32>
    %40 = arith.mulf %39, %33 : vector<1x2x128xf32>
    %41 = arith.addf %23, %40 : vector<1x2x128xf32>
    %c2_28 = arith.constant 2 : index
    %c2_29 = arith.constant 2 : index
    %42 = memref.load %arg2[%c2_28, %c2_29] : memref<4x4xf32, #tpu.memory_space<smem>>
    %43 = vector.broadcast %42 : f32 to vector<1x2x128xf32>
    %44 = arith.mulf %43, %33 : vector<1x2x128xf32>
    %45 = arith.addf %27, %44 : vector<1x2x128xf32>
    %c3_30 = arith.constant 3 : index
    %c2_31 = arith.constant 2 : index
    %46 = memref.load %arg2[%c3_30, %c2_31] : memref<4x4xf32, #tpu.memory_space<smem>>
    %47 = vector.broadcast %46 : f32 to vector<1x2x128xf32>
    %48 = arith.mulf %47, %33 : vector<1x2x128xf32>
    %49 = arith.addf %31, %48 : vector<1x2x128xf32>
    %c0_32 = arith.constant 0 : index
    %c3_33 = arith.constant 3 : index
    %c0_34 = arith.constant 0 : index
    %c0_35 = arith.constant 0 : index
    %50 = vector.load %arg3[%c0_32, %c3_33, %c0_34, %c0_35] : memref<1x4x2x128xf32, #tpu.memory_space<vmem>>, vector<1x1x2x128xf32>
    %51 = vector.shape_cast %50 : vector<1x1x2x128xf32> to vector<1x2x128xf32>
    %c0_36 = arith.constant 0 : index
    %c3_37 = arith.constant 3 : index
    %52 = memref.load %arg2[%c0_36, %c3_37] : memref<4x4xf32, #tpu.memory_space<smem>>
    %53 = vector.broadcast %52 : f32 to vector<1x2x128xf32>
    %54 = arith.mulf %53, %51 : vector<1x2x128xf32>
    %55 = arith.addf %37, %54 : vector<1x2x128xf32>
    %c1_38 = arith.constant 1 : index
    %c3_39 = arith.constant 3 : index
    %56 = memref.load %arg2[%c1_38, %c3_39] : memref<4x4xf32, #tpu.memory_space<smem>>
    %57 = vector.broadcast %56 : f32 to vector<1x2x128xf32>
    %58 = arith.mulf %57, %51 : vector<1x2x128xf32>
    %59 = arith.addf %41, %58 : vector<1x2x128xf32>
    %c2_40 = arith.constant 2 : index
    %c3_41 = arith.constant 3 : index
    %60 = memref.load %arg2[%c2_40, %c3_41] : memref<4x4xf32, #tpu.memory_space<smem>>
    %61 = vector.broadcast %60 : f32 to vector<1x2x128xf32>
    %62 = arith.mulf %61, %51 : vector<1x2x128xf32>
    %63 = arith.addf %45, %62 : vector<1x2x128xf32>
    %c3_42 = arith.constant 3 : index
    %c3_43 = arith.constant 3 : index
    %64 = memref.load %arg2[%c3_42, %c3_43] : memref<4x4xf32, #tpu.memory_space<smem>>
    %65 = vector.broadcast %64 : f32 to vector<1x2x128xf32>
    %66 = arith.mulf %65, %51 : vector<1x2x128xf32>
    %67 = arith.addf %49, %66 : vector<1x2x128xf32>
    %c0_44 = arith.constant 0 : index
    %c0_45 = arith.constant 0 : index
    %c0_46 = arith.constant 0 : index
    %c0_47 = arith.constant 0 : index
    %68 = vector.load %arg4[%c0_44, %c0_45, %c0_46, %c0_47] : memref<1x4x2x128xf32, #tpu.memory_space<vmem>>, vector<1x1x2x128xf32>
    %69 = vector.shape_cast %68 : vector<1x1x2x128xf32> to vector<1x2x128xf32>
    %70 = vector.shape_cast %55 : vector<1x2x128xf32> to vector<1x1x2x128xf32>
    tpu.vector_store %arg4[%c0_44, %c0_45, %c0_46, %c0_47], %70 {strides = array<i32>} : memref<1x4x2x128xf32, #tpu.memory_space<vmem>>, vector<1x1x2x128xf32>,
    %c0_48 = arith.constant 0 : index
    %c1_49 = arith.constant 1 : index
    %c0_50 = arith.constant 0 : index
    %c0_51 = arith.constant 0 : index
    %71 = vector.load %arg4[%c0_48, %c1_49, %c0_50, %c0_51] : memref<1x4x2x128xf32, #tpu.memory_space<vmem>>, vector<1x1x2x128xf32>
    %72 = vector.shape_cast %71 : vector<1x1x2x128xf32> to vector<1x2x128xf32>
    %73 = vector.shape_cast %59 : vector<1x2x128xf32> to vector<1x1x2x128xf32>
    tpu.vector_store %arg4[%c0_48, %c1_49, %c0_50, %c0_51], %73 {strides = array<i32>} : memref<1x4x2x128xf32, #tpu.memory_space<vmem>>, vector<1x1x2x128xf32>,
    %c0_52 = arith.constant 0 : index
    %c2_53 = arith.constant 2 : index
    %c0_54 = arith.constant 0 : index
    %c0_55 = arith.constant 0 : index
    %74 = vector.load %arg4[%c0_52, %c2_53, %c0_54, %c0_55] : memref<1x4x2x128xf32, #tpu.memory_space<vmem>>, vector<1x1x2x128xf32>
    %75 = vector.shape_cast %74 : vector<1x1x2x128xf32> to vector<1x2x128xf32>
    %76 = vector.shape_cast %63 : vector<1x2x128xf32> to vector<1x1x2x128xf32>
    tpu.vector_store %arg4[%c0_52, %c2_53, %c0_54, %c0_55], %76 {strides = array<i32>} : memref<1x4x2x128xf32, #tpu.memory_space<vmem>>, vector<1x1x2x128xf32>,
    %c0_56 = arith.constant 0 : index
    %c3_57 = arith.constant 3 : index
    %c0_58 = arith.constant 0 : index
    %c0_59 = arith.constant 0 : index
    %77 = vector.load %arg4[%c0_56, %c3_57, %c0_58, %c0_59] : memref<1x4x2x128xf32, #tpu.memory_space<vmem>>, vector<1x1x2x128xf32>
    %78 = vector.shape_cast %77 : vector<1x1x2x128xf32> to vector<1x2x128xf32>
    %79 = vector.shape_cast %67 : vector<1x2x128xf32> to vector<1x1x2x128xf32>
    tpu.vector_store %arg4[%c0_56, %c3_57, %c0_58, %c0_59], %79 {strides = array<i32>} : memref<1x4x2x128xf32, #tpu.memory_space<vmem>>, vector<1x1x2x128xf32>,
    return
  }
  func.func @transform_0(%arg0: i32, %arg1: i32) -> (i32, i32) {
    %c0_i32 = arith.constant 0 : i32
    %c0_i32_0 = arith.constant 0 : i32
    %c0_i32_1 = arith.constant 0 : i32
    return %c0_i32, %c0_i32_0 : i32, i32
  }
  func.func @transform_1(%arg0: i32, %arg1: i32) -> (i32, i32, i32, i32) {
    %c0_i32 = arith.constant 0 : i32
    %c0_i32_0 = arith.constant 0 : i32
    %c0_i32_1 = arith.constant 0 : i32
    return %arg0, %c0_i32, %arg1, %c0_i32_0 : i32, i32, i32, i32
  }
  func.func @transform_2(%arg0: i32, %arg1: i32) -> (i32, i32, i32, i32) {
    %c0_i32 = arith.constant 0 : i32
    %c0_i32_0 = arith.constant 0 : i32
    %c0_i32_1 = arith.constant 0 : i32
    return %arg0, %c0_i32, %arg1, %c0_i32_0 : i32, i32, i32, i32
  }
}

</mosaic_0001>

<bundles_post_ra>
// kernel: tpu_custom_call.1
= control target key start
LH: loop header
LB: loop body
LE: loop exit
PB: predicated region body
PF: predicated region fallthrough
CT: control target
= control target key end

     0   :  { %7 = vsyncpa [#allocation5], 0  ;;  %s867_s0 = inlined_call_operand.hbm [shape: f32[4,4], index: 0, kind: input, shape index: {}]   ;;  %s868_s1 = inlined_call_operand.hbm [shape: f32[2,4,2,128], index: 1, kind: input, shape index: {}]   ;;  %s869_s2 = inlined_call_operand.hbm [shape: f32[2,4,2,128], index: 2, kind: output, shape index: {}]  }
   0x1   :  { %8 = vsyncpa [#allocation3], 0 }
   0x2   :  { %10 = vsyncpa [#allocation3 + $0x1], 0 }
   0x3   :  { %11 = vsyncpa [#allocation4], 0 }
   0x4   :  { %13 = vsyncpa [#allocation4 + $0x1], 0  ;;  %s647_s9 = smov 0   ;;  %s649_s10 = smov 0  }
   0x5   :  { %s651_s11 = smov 0   ;;  %s653_s12 = smov 0  }
   0x6   :  { %s655_s13 = smov 0   ;;  %s657_s14 = smov 0  }
   0x7 LB: > { %s377_s15 = sadd.s32 4294967295, %s623_s14   ;;  %s378_s16 = sadd.s32 4294967294, %s623_s14   ;;  %s623_s14 = sphi %s657_s14, %s19_s14   ;;  %s619_s13 = sphi %s655_s13, %s889_s13   ;;  %s615_s12 = sphi %s653_s12, %s888_s12   ;;  %s611_s11 = sphi %s651_s11, %s887_s11   ;;  %s607_s10 = sphi %s649_s10, %s886_s10   ;;  %s603_s9 = sphi %s647_s9, %s885_s9  }
   0x8   : > { %s61_s17 = sadd.s32 1, %s611_s11  ;;  %p68_p0 = scmp.ne.s32.totalorder %s611_s11, %s607_s10 }
   0x9   : > { %p69_p1 = scmp.eq.s32.totalorder %s623_s14, 0  ;;  %p74_p2 = scmp.ne.s32.totalorder %s607_s10, %s603_s9 }
   0xa   : > { %p685_p3 = scmp.eq.s32.totalorder %s377_s15, 0  ;;  %p100_p4 = scmp.eq.s32.totalorder %s377_s15, 1 }
   0xb   : > { %p70_p5 = por %p69_p1, %p68_p0  ;;  %p106_p6 = scmp.eq.s32.totalorder %s378_s16, 1 }
   0xc   : > { %s874_s18 = scalar_select %p685_p3, 1, 0 }
   0xd   : > { %p691_p7 = por %p685_p3, %p74_p2  ;;  %p695_p8 = por %p100_p4, %p68_p0 }
   0xe   : > { %p699_p9 = por %p106_p6, %p74_p2  ;;  %p379_p10 = scmp.ge.s32.totalorder %s623_s14, 1 }
   0xf   : > { %s875_s19 = scalar_select %p691_p7, 1, 0 }
  0x10   : > { %s876_s20 = scalar_select %p695_p8, 1, 0 }
  0x11   : > { %s877_s21 = scalar_select %p699_p9, 1, 0 }
  0x12   : > { %p113_p11 = scmp.lt.s32.totalorder %s623_s14, 3  ;;  %p438_p1 = scmp.lt.s32.totalorder %s623_s14, 2 }
  0x13   : > { %s135_s23 = sand.u32 1, %s611_s11   ;;  %s31_s25 = sadd.s32 1, %s619_s13 }
  0x14   : > { %p706_p13 = pnand %p379_p10, %p113_p11  ;;  %p714_p0 = pnand %p438_p1, %p70_p5 }
  0x15   : > { %s382_s26 = sshll.u32 %s135_s23, 3  ;;  %p33_p4 = scmp.ge.s32.totalorder %s31_s25, 2 }
  0x16   : > { %p425_p7 = pneg %p706_p13  ;;  %s494_s29 = scalar_lea.hbm %s867_s0, 64 }
  0x17   : > { %p495_p6 = scmp.ne.s32.totalorder %s867_s0, %s494_s29  ;;  %p501_p5 = scmp.lt.u32.totalorder %s494_s29, %s867_s0 }
  0x18   : > { %p426_p2 = pnand %p425_p7, %p685_p3 }
  0x1a   : > { %p496_p10 = pneg %p426_p2 }
  0x1c   : > { %p497_p11 = pnand %p496_p10, %p495_p6 }
  0x1e   : > { %p498_p12 = pneg %p497_p11 }
  0x20   : > { %p503_p1 = pnand %p501_p5, %p498_p12 }
  0x22   : > { %506 = shalt.err (!%p503_p1)
}
  0x23   : > { %s625_s6 = smov [#allocation2]   ;;  %s891_s25 = smov (%p33_p4, %s31_s25), 0 }
  0x24   : > { %428 = dma.hbm_to_smem (!%p426_p2), %s867_s0, 64, %s625_s6, [#allocation5]  }
  0x25   : > { %s415_s15 = sshll.u32 %s619_s13, 7  ;;  %s56_s16 = ssub.s32 %s619_s13, %s891_s25 }
  0x26   : > { %s741_s29 = scalar_lea.hbm %s868_s1, %s415_s15  ;;  %p59_p7 = scmp.eq.s32.totalorder %s56_s16, 0 }
  0x27   : > { %s139_s30 = scalar_lea.vmem [#allocation6], %s382_s26  ;;  %s750_s5 = scalar_lea.sflag [#allocation3], %s135_s23 }
  0x28   : > { %s147_s3 = sshll.u32 %s139_s30, 4  ;;  %s507_s6 = scalar_lea.hbm %s741_s29, 128  ;;  %s743_s3 = int_to_ptr.vmem [resolvable:$true] %s147_s3 }
  0x29   : > { %s748_s4 = scalar_select %p59_p7, %s611_s11, %s61_s17  }
  0x2a   : > { %p508_p12 = scmp.ne.s32.totalorder %s741_s29, %s507_s6  ;;  %p509_p2 = pneg %p714_p0 }
  0x2b   : > { %s512_s26 = scalar_lea.hbm %s868_s1, 256  ;;  %p513_p10 = scmp.lt.u32.totalorder %s741_s29, %s868_s1 }
  0x2c   : > { %p510_p4 = pnand %p509_p2, %p508_p12  ;;  %p514_p11 = scmp.lt.u32.totalorder %s512_s26, %s507_s6 }
  0x2d   : > { %p516_p1 = scmp.lt.u32.totalorder %s507_s6, %s741_s29 }
  0x2e   : > { %p511_p6 = pneg %p510_p4  ;;  %p515_p5 = por %p514_p11, %p513_p10 }
  0x30   : > { %p517_p7 = por %p516_p1, %p515_p5 }
  0x32   : > { %p518_p9 = pnand %p517_p7, %p511_p6 }
  0x34   : > { %521 = shalt.err (!%p518_p9)
}
  0x35   : > { %s522_s17 = scalar_lea.vmem %s743_s3, 128  ;;  %s626_s23 = smov [#allocation6]  }
  0x36   : > { %p523_p12 = scmp.ne.s32.totalorder %s743_s3, %s522_s17  ;;  %s527_s27 = sshll.u32 %s626_s23, 4  ;;  %s528_s27 = int_to_ptr.vmem [resolvable:$false] %s527_s27 }
  0x37   : > { %s529_s28 = scalar_lea.vmem %s528_s27, 256  ;;  %p530_p3 = scmp.lt.s32.totalorder %s743_s3, %s528_s27 }
  0x38   : > { %p525_p4 = pnand %p523_p12, %p509_p2  ;;  %p531_p10 = scmp.lt.s32.totalorder %s529_s28, %s522_s17 }
  0x3a   : > { %p526_p8 = pneg %p525_p4  ;;  %p532_p11 = por %p531_p10, %p530_p3 }
  0x3c   : > { %p533_p5 = pnand %p532_p11, %p526_p8 }
  0x3e   : > { %536 = shalt.err (!%p533_p5)
}
  0x3f   : > { %s627_s30 = smov 32   ;;  %s628_s6 = smov 2  }
  0x40   : > { %432 = dma.hbm_to_vmem [thread:$0]  (!%p714_p0), %s741_s29, 128, %s743_s3, %s750_s5, %s627_s30, %s627_s30, %s628_s6  }
  0x41   : > { %159 = sbr.rel (%p706_p13) target bundleno = 117 (0x75), region = 28  ;;  %p880_p9 = scmp.ne.s32.totalorder (!%p706_p13), %s874_s18, 0 }
  0x48   : > { %590 = dma.done.wait (%p880_p9), [#allocation5], 64  }
  0x49   : > { %592 = vsyncadd (%p880_p9), [#allocation5], 4294967232  ;;  %s785_s7 = sand.u32 1, %s607_s10   ;;  %p881_p3 = scmp.ne.s32.totalorder %s875_s19, 0 }
  0x4a   : > { %s387_s8 = sshll.u32 %s785_s7, 3  ;;  %s166_s26 = scalar_lea.sflag [#allocation3], %s785_s7 }
  0x4b   : > { %s169_s24 = scalar_lea.vmem [#allocation6], %s387_s8 }
  0x4c   : > { %594 = dma.done.wait (%p881_p3), %s166_s26, 128  }
  0x4d   : > { %596 = vsyncadd (%p881_p3), %s166_s26, 4294967168 }
  0x4e   : > { %174 = sfence }
  0x4f   : > { %s192_s22 = sld [smem:[#allocation2]]  ;;  %s393_s18 = sld [smem:[#allocation2 + $0x1]]  ;;  %v191_v0 = vld [vmem:[%s169_s24] sm:$0x3]  ;;  %v392_v1 = vld [vmem:[%s169_s24 + $0x2] sm:$0x3] }
  0x50   : > { %s398_s29 = sld [smem:[#allocation2 + $0x2]]  ;;  %s403_s3 = sld [smem:[#allocation2 + $0x3]]  ;;  %v397_v3 = vld [vmem:[%s169_s24 + $0x4] sm:$0x3]  ;;  %v402_v6 = vld [vmem:[%s169_s24 + $0x6] sm:$0x3] }
  0x51   : > { %s389_s5 = sld [smem:[#allocation2 + $0x80]]  ;;  %s394_s15 = sld [smem:[#allocation2 + $0x81]] }
  0x52   : > { %s399_s16 = sld [smem:[#allocation2 + $0x82]]  ;;  %s404_s17 = sld [smem:[#allocation2 + $0x83]] }
  0x53   : > { %s390_s23 = sld [smem:[#allocation2 + $0x100]]  ;;  %s795_s27 = sld [smem:[#allocation2 + $0x101]] }
  0x54   : > { %s400_s19 = sld [smem:[#allocation2 + $0x102]]  ;;  %s405_s28 = sld [smem:[#allocation2 + $0x103]] }
  0x55   : > { %v193_v2 = vstv %s192_s22  ;;  %v207_v5 = vstv %s393_s18  ;;  %s797_s30 = sld [smem:[#allocation2 + $0x180]]  ;;  %s799_s6 = sld [smem:[#allocation2 + $0x181]] }
  0x56   : > { %v194_v4 = vmul.f32 %v193_v2, %v191_v0  ;;  %v208_v7 = vmul.f32 %v392_v1, %v207_v5  ;;  %v225_v8 = vstv %s398_s29  ;;  %v243_v9 = vstv %s403_s3  ;;  %s801_s26 = sld [smem:[#allocation2 + $0x182]]  ;;  %s803_s22 = sld [smem:[#allocation2 + $0x183]] }
  0x57   : > { %v226_v10 = vmul.f32 %v397_v3, %v225_v8  ;;  %v196_v11 = vstv %s389_s5  ;;  %v244_v13 = vmul.f32 %v402_v6, %v243_v9  ;;  %v211_v15 = vstv %s394_s15  ;;  %s190_s24 = scalar_lea.vmem [#allocation7], %s387_s8  ;;  %s416_s29 = sshll.u32 %s615_s12, 7 }
  0x58   : > { %v209_v12 = vadd.f32 %v208_v7, %v194_v4  ;;  %v197_v14 = vmul.f32 %v196_v11, %v191_v0  ;;  %v212_v16 = vmul.f32 %v392_v1, %v211_v15  ;;  %v229_v17 = vstv %s399_s16  ;;  %s280_s18 = sshll.u32 %s190_s24, 4  ;;  %s818_s5 = scalar_lea.hbm %s869_s2, %s416_s29  ;;  %s813_s18 = int_to_ptr.vmem [resolvable:$true] %s280_s18 }
  0x59   : > { %v247_v18 = vstv %s404_s17  ;;  %v230_v20 = vmul.f32 %v397_v3, %v229_v17  ;;  %v199_v22 = vstv %s390_s23  ;;  %v215_v25 = vstv %s795_s27  ;;  %s266_s15 = scalar_lea.sflag [#allocation4], %s785_s7  ;;  %s537_s16 = scalar_lea.vmem %s813_s18, 128 }
  0x5a   : > { %v227_v19 = vadd.f32 %v226_v10, %v209_v12  ;;  %v248_v21 = vmul.f32 %v402_v6, %v247_v18  ;;  %v213_v23 = vadd.f32 %v212_v16, %v197_v14  ;;  %v200_v24 = vmul.f32 %v199_v22, %v191_v0  ;;  %p538_p8 = scmp.ne.s32.totalorder %s813_s18, %s537_s16  ;;  %p882_p13 = scmp.ne.s32.totalorder %s876_s20, 0 }
  0x5b   : > { %v233_v26 = vstv %s400_s19  ;;  %v216_v28 = vmul.f32 %v392_v1, %v215_v25  ;;  %v251_v30 = vstv %s405_s28  ;;  %v202_v33 = vstv %s797_s30  ;;  %s629_s12 = smov [#allocation7]  }
  0x5c   : > { %v245_v27 = vadd.f32 %v244_v13, %v227_v19  ;;  %v234_v29 = vmul.f32 %v397_v3, %v233_v26  ;;  %v231_v31 = vadd.f32 %v230_v20, %v213_v23  ;;  %v252_v32 = vmul.f32 %v402_v6, %v251_v30  ;;  %p539_p0 = pnand %p538_p8, %p882_p13  ;;  %s541_s17 = sshll.u32 %s629_s12, 4  ;;  %s542_s17 = int_to_ptr.vmem [resolvable:$false] %s541_s17 }
  0x5d   : > { %v219_v34 = vstv %s799_s6  ;;  %v217_v35 = vadd.f32 %v216_v28, %v200_v24  ;;  %v203_v36 = vmul.f32 %v202_v33, %v191_v0  ;;  %v237_v38 = vstv %s801_s26  ;;  %s543_s23 = scalar_lea.vmem %s542_s17, 256  ;;  %p544_p6 = scmp.lt.s32.totalorder %s813_s18, %s542_s17 }
  0x5e   : > { %258 = vst [vmem:[%s190_s24] sm:$0x3] %v245_v27  ;;  %v220_v37 = vmul.f32 %v392_v1, %v219_v34  ;;  %v249_v39 = vadd.f32 %v248_v21, %v231_v31  ;;  %v238_v40 = vmul.f32 %v397_v3, %v237_v38  ;;  %v255_v41 = vstv %s803_s22  ;;  %p540_p2 = pneg %p539_p0  ;;  %p545_p1 = scmp.lt.s32.totalorder %s543_s23, %s537_s16 }
  0x5f   : > { %v235_v42 = vadd.f32 %v234_v29, %v217_v35  ;;  %v256_v44 = vmul.f32 %v402_v6, %v255_v41 }
  0x60   : > { %v221_v43 = vadd.f32 %v220_v37, %v203_v36  ;;  %407 = vst [vmem:[%s190_s24 + $0x2] sm:$0x3] %v249_v39  ;;  %p546_p7 = por %p545_p1, %p544_p6 }
  0x61   : > { %v253_v45 = vadd.f32 %v252_v32, %v235_v42 }
  0x62   : > { %v239_v46 = vadd.f32 %v238_v40, %v221_v43  ;;  %p547_p12 = pnand %p546_p7, %p540_p2 }
  0x63   : > { %408 = vst [vmem:[%s190_s24 + $0x4] sm:$0x3] %v253_v45 }
  0x64   : > { %v257_v47 = vadd.f32 %v256_v44, %v239_v46 }
  0x66   : > { %409 = vst [vmem:[%s190_s24 + $0x6] sm:$0x3] %v257_v47 }
  0x67   : > { %550 = shalt.err (!%p547_p12)
}
  0x68   : > { %s551_s27 = scalar_lea.hbm %s818_s5, 128  ;;  %s555_s30 = scalar_lea.hbm %s869_s2, 256 }
  0x69   : > { %p552_p4 = scmp.ne.s32.totalorder %s818_s5, %s551_s27  ;;  %p556_p5 = scmp.lt.u32.totalorder %s818_s5, %s869_s2 }
  0x6a   : > { %p557_p9 = scmp.lt.u32.totalorder %s555_s30, %s551_s27  ;;  %p559_p8 = scmp.lt.u32.totalorder %s551_s27, %s818_s5 }
  0x6b   : > { %p553_p10 = pnand %p552_p4, %p882_p13 }
  0x6c   : > { %p558_p3 = por %p557_p9, %p556_p5 }
  0x6d   : > { %p554_p11 = pneg %p553_p10 }
  0x6e   : > { %p560_p0 = por %p559_p8, %p558_p3 }
  0x70   : > { %p561_p2 = pnand %p560_p0, %p554_p11 }
  0x72   : > { %564 = shalt.err (!%p561_p2)
}
  0x73   : > { %s630_s22 = smov 32   ;;  %s631_s24 = smov 2  }
  0x74   : > { %423 = dma.vmem_to_hbm [thread:$0]  (%p882_p13), %s813_s18, 128, %s818_s5, %s266_s15, %s630_s22, %s630_s22, %s631_s24  }
  0x75 PF: > { %s295_s29 = sand.u32 1, %s603_s9   ;;  %p883_p6 = scmp.ne.s32.totalorder %s877_s21, 0 }
  0x76   : > { %p884_p1 = scmp.ge.s32.totalorder %s623_s14, 2  ;;  %s296_s8 = scalar_lea.sflag [#allocation4], %s295_s29 }
  0x78   : > { %p434_p7 = pnand %p884_p1, %p883_p6 }
  0x7a   : > { %598 = dma.done.wait (!%p434_p7), %s296_s8, 128  }
  0x7b   : > { %600 = vsyncadd (!%p434_p7), %s296_s8, 4294967168  ;;  %s19_s14 = sadd.s32 1, %s623_s14   ;;  %s885_s9 = smov %s607_s10 }
  0x7c   : > { %p16_p12 = scmp.ge.s32.totalorder %s19_s14, 4   ;;  %s886_s10 = smov %s611_s11 }
  0x7d   : > { %s887_s11 = smov %s748_s4  ;;  %s888_s12 = smov %s619_s13 }
  0x7e   : > { %s889_s13 = smov %s891_s25  ;;  %18 = sbr.rel (!%p16_p12) target bundleno = 7 (0x7), region = 84 }
  0x85   :  { %301 = vsyncpa [#allocation3], 1 }
  0x86   :  { %303 = vsyncpa [#allocation3 + $0x1], 1 }
  0x87   :  { %304 = vsyncpa [#allocation4], 1 }
  0x88   :  { %306 = vsyncpa [#allocation4 + $0x1], 1 }
  0x89   :  { %307 = vsyncpa [#allocation5], 1 }
  0x8a   :  { %309 = vsyncpa [#allocation5 + $0x1], 1 }

</bundles_post_ra>
